<compile_context>
chip_gen: v5e
topology: v5e:2x2
jax: 0.10.0
libtpu: 0.0.40
codegen_flags: <defaults>
</compile_context>

<pallas_src>
import functools

import jax
import jax.numpy as jnp
import numpy as np
from jax.experimental import pallas as pl
from jax.experimental.pallas import tpu as pltpu


def _round_up(x, m):
    return (x + m - 1) // m * m


def drloss_kernel(inp_ref, tgt_ref, out_ref, *, num_tasks, activation,
                  batch, block_b, rows_out):
    """One grid step: (2T-1, TB) inputs + (T, TB) targets -> (rows_out, 128) sums."""
    T = num_tasks
    eps = jnp.float32(1e-7)

    # Ref row-slices (no full-block value materialization); cast to f32 in the
    # kernel so bf16/f16 inputs travel HBM->VMEM at native width.
    raw_head = inp_ref[0:T, :].astype(jnp.float32)           # (T,   TB)
    x_imp = inp_ref[T:2 * T - 1, :].astype(jnp.float32)      # (T-1, TB)
    y = tgt_ref[...].astype(jnp.float32)                     # (T,   TB)

    ragged = (batch % block_b) != 0
    if ragged:
        # Neutralize garbage columns of the padded last block BEFORE any
        # log/exp, then zero their loss contribution afterwards.
        col = (jax.lax.broadcasted_iota(jnp.int32, (1, block_b), 1)
               + pl.program_id(0) * block_b)
        valid = col < batch                                   # (1, TB)
        fmask = valid.astype(jnp.float32)
        raw_head = jnp.where(valid, raw_head,
                             jnp.float32(0.0 if activation else 0.5))
        x_imp = jnp.where(valid, x_imp, 0.0)
        y = jnp.where(valid, y, 0.0)

    if activation:
        # sigmoid and IPS share a single exp slab:
        #   e = exp(-z);  sigmoid(z) = 1/(1+e);  1/sigmoid(z) = 1+e.
        e = jnp.exp(-raw_head)                                # (T, TB), one EUP slab op
        denom = 1.0 + e
        x_head = 1.0 / denom                                  # exact sigmoid
        ips = jnp.clip(denom[:T - 1, :], -1000.0, 1000.0)     # free given e
    else:
        # Heads may be <= 0 here; keep the exact clipped reciprocal.
        x_head = raw_head
        ips = jnp.clip(1.0 / x_head[:T - 1, :], -1000.0, 1000.0)

    # ---- task losses: sequential clamped cumulative product (VALU only),
    # then ONE slab BCE so the logs stay sublane-dense on (T, TB). ----
    p = jnp.ones((1, block_b), jnp.float32)
    p_rows = []
    for t in range(T):
        p = jnp.maximum(p * x_head[t:t + 1, :], eps)
        p_rows.append(p)
    p_mat = jnp.concatenate(p_rows, axis=0)                   # (T, TB)
    # p >= 1e-7 -> log(p) >= -16.2, no -100 clamp needed; (1-p) can hit 0.
    log_p = jnp.log(p_mat)
    log_1mp = jnp.maximum(jnp.log(1.0 - p_mat), -100.0)
    task_loss = -(y * log_p + (1.0 - y) * log_1mp)            # (T, TB)

    # ---- doubly-robust path, vectorized on (T-1, TB) slabs ----
    cur = x_head[1:, :]
    ycur = y[1:, :]
    ylab = y[:T - 1, :]
    log_c = jnp.maximum(jnp.log(cur), -100.0)
    log_1mc = jnp.maximum(jnp.log(1.0 - cur), -100.0)
    bce_c = -(ycur * log_c + (1.0 - ycur) * log_1mc)
    err = bce_c - x_imp
    dr_loss = x_imp + (err + err * err) * ylab * ips          # (T-1, TB)

    if ragged:
        task_loss = task_loss * fmask
        dr_loss = dr_loss * fmask

    task_sums = jnp.sum(task_loss, axis=1, keepdims=True)     # (T,   1)
    dr_sums = jnp.sum(dr_loss, axis=1, keepdims=True)         # (T-1, 1)
    pieces = [task_sums, dr_sums]
    pad = rows_out - (2 * T - 1)
    if pad > 0:
        pieces.append(jnp.zeros((pad, 1), jnp.float32))
    sums = jnp.concatenate(pieces, axis=0)                     # (rows_out, 1)
    # Lane-dense, unmasked (8,128) tile store; lane 0 is consumed in JAX glue.
    out_ref[...] = jnp.broadcast_to(sums, (rows_out, 128))


def _choose_block_b(B, T, in_dtype, tgt_dtype,
                    vmem_budget_bytes=20 << 20, max_block=131072):
    """Batch-block size: fits a ~20 MiB VMEM budget, aims for >=4 grid blocks
    (so v7x's two TensorCores both get work), capped at 128K lanes."""
    in_item = jnp.dtype(in_dtype).itemsize
    tgt_item = jnp.dtype(tgt_dtype).itemsize
    # double-buffered input/target blocks + ~6 live f32 (T, TB)-ish temporaries
    bytes_per_col = 2 * ((2 * T - 1) * in_item + T * tgt_item) + 6 * T * 4 + 16
    cap = max(128, (vmem_budget_bytes // bytes_per_col) // 128 * 128)
    quarter = _round_up(max(pl.cdiv(B, 4), 1), 128)
    blk = min(cap, quarter, max_block, _round_up(B, 128))
    return max(blk, 128)


def drloss(inputs, targets, ips_weights=0.1, task_weights=1.0, activation=True,
           block_b=None):
    """Pallas implementation of DRLoss.forward.

    inputs : (B, 2*num_tasks - 1)  head logits (or probs) + imputation outputs
    targets: (B, num_tasks)        binary labels
    returns (total_loss, loss_dr[(T-1,)], loss_task[(T,)])
    """
    B, C = inputs.shape
    T = targets.shape[-1]
    assert T >= 2 and C == 2 * T - 1

    rows_in = 2 * T - 1
    rows_out = _round_up(rows_in, 8)

    if block_b is None:
        block_b = _choose_block_b(B, T, inputs.dtype, targets.dtype)
    else:
        block_b = max(128, _round_up(min(block_b, _round_up(B, 128)), 128))
    n_blocks = pl.cdiv(B, block_b)

    # No host-side pack / pad / f32 cast: only the two batch-last relayouts.
    # TODO(synk): emit batch-last (2T-1, B)/(T, B) tensors from the producer to
    # drop these transposes (the last remaining extra HBM pass).
    inputs_t = inputs.T        # (2T-1, B), native dtype
    targets_t = targets.T      # (T,    B), native dtype

    kernel = functools.partial(
        drloss_kernel, num_tasks=T, activation=activation,
        batch=B, block_b=block_b, rows_out=rows_out)

    # TODO(synk): on v5e a third pipeline buffer (pipeline_mode=pl.Buffered(3))
    # on the input specs can hide HBM jitter; omitted to keep lowering portable.
    partial_sums = pl.pallas_call(
        kernel,
        out_shape=jax.ShapeDtypeStruct((rows_out, n_blocks * 128), jnp.float32),
        grid=(n_blocks,),
        in_specs=[pl.BlockSpec((rows_in, block_b), lambda i: (0, i)),
                  pl.BlockSpec((T, block_b), lambda i: (0, i))],
        out_specs=pl.BlockSpec((rows_out, 128), lambda i: (0, i)),
        compiler_params=pltpu.CompilerParams(
            dimension_semantics=("parallel",),
            vmem_limit_bytes=32 << 20),
    )(inputs_t, targets_t)

    # Tiny final reduction in plain JAX: lane 0 of each block tile, sum, /B.
    sums = partial_sums.reshape(rows_out, n_blocks, 128)[:, :, 0].sum(axis=1)
    task_mean = sums[:T] / B                  # (T,)
    dr_mean = sums[T:2 * T - 1] / B           # (T-1,)

    if isinstance(ips_weights, (list, tuple)):
        assert len(ips_weights) + 1 == T
        ips_w = jnp.asarray(ips_weights, jnp.float32)
    else:
        ips_w = jnp.full((T - 1,), ips_weights, jnp.float32)
    if isinstance(task_weights, (list, tuple)):
        assert len(task_weights) == T
        task_w = jnp.asarray(task_weights, jnp.float32)
    else:
        task_w = jnp.full((T,), task_weights, jnp.float32)

    loss_dr = dr_mean * ips_w
    loss_task = task_mean * task_w
    total = jnp.sum(loss_dr) + jnp.sum(loss_task)
    return total, loss_dr, loss_task


# ----------------------------- pure-JAX reference ---------------------------

def _bce(p, t):
    # PyTorch F.binary_cross_entropy clamps each log term at -100.
    log_p = jnp.maximum(jnp.log(p), -100.0)
    log_1mp = jnp.maximum(jnp.log(1.0 - p), -100.0)
    return -(t * log_p + (1.0 - t) * log_1mp)


def drloss_ref(inputs, targets, ips_weights=0.1, task_weights=1.0, activation=True):
    """Pure-JAX reference mirroring the PyTorch module, for verification."""
    T = targets.shape[-1]
    x = inputs.astype(jnp.float32)
    y = targets.astype(jnp.float32)
    if activation:
        x = jnp.concatenate([jax.nn.sigmoid(x[:, :T]), x[:, T:]], axis=1)
    eps = 1e-7
    p = jnp.ones_like(y[:, 0])
    loss_task, loss_dr = [], []
    label, out = [], []
    for i in range(T):
        p = jnp.maximum(p * x[:, i], eps)
        label.append(y[:, i])
        out.append(x[:, i])
        loss_task.append(jnp.mean(_bce(p, y[:, i])))
    for i in range(1, T):
        imp_out = x[:, i + T - 1]
        ips = jnp.clip(1.0 / out[i - 1], -1000.0, 1000.0)
        err = _bce(x[:, i], y[:, i]) - imp_out
        ld_err = imp_out + err * label[i - 1] * ips
        ld_imp = err * err * label[i - 1] * ips
        loss_dr.append(jnp.mean(ld_err + ld_imp))
    ips_w = ips_weights if isinstance(ips_weights, (list, tuple)) \
        else [ips_weights] * (T - 1)
    task_w = task_weights if isinstance(task_weights, (list, tuple)) \
        else [task_weights] * T
    loss_dr = jnp.stack([loss_dr[i] * ips_w[i] for i in range(T - 1)])
    loss_task = jnp.stack([loss_task[i] * task_w[i] for i in range(T)])
    return jnp.sum(loss_dr) + jnp.sum(loss_task), loss_dr, loss_task


if __name__ == "__main__":
    key = jax.random.PRNGKey(0)
    k1, k2 = jax.random.split(key)

    B = 1000          # deliberately not a multiple of 128 -> exercises masking
    num_tasks = 3     # >= 2
    C = 2 * num_tasks - 1

    logits = jax.random.normal(k1, (B, C), dtype=jnp.float32)
    targets = jax.random.bernoulli(k2, 0.5, (B, num_tasks)).astype(jnp.float32)

    # activation=False path needs probability-valued heads (as in torch usage).
    probs_in = jnp.concatenate(
        [jax.nn.sigmoid(logits[:, :num_tasks]), logits[:, num_tasks:]], axis=1)
    logits_bf16 = logits.astype(jnp.bfloat16)   # native-dtype ingestion path

    cases = [
        (logits, dict(ips_weights=0.1, task_weights=1.0, activation=True)),
        (logits, dict(ips_weights=[0.2, 0.3], task_weights=[1.0, 0.5, 2.0],
                      activation=True)),
        (probs_in, dict(ips_weights=0.1, task_weights=1.0, activation=False)),
        (logits, dict(ips_weights=0.1, task_weights=1.0, activation=True,
                      block_b=1024)),                       # single-block path
        (logits_bf16, dict(ips_weights=0.1, task_weights=1.0, activation=True)),
    ]

    for inp, cfg in cases:
        ref_cfg = {k: v for k, v in cfg.items() if k != "block_b"}
        got = drloss(inp, targets, **cfg)
        jax.block_until_ready(got)
        want = drloss_ref(inp, targets, **ref_cfg)
        for g, w in zip(got, want):
            np.testing.assert_allclose(np.asarray(g), np.asarray(w),
                                       rtol=1e-4, atol=1e-4)

    print("KERNEL_OK")
</pallas_src>

<mosaic_0001>
module attributes {stable_mosaic.version = 11 : i64} {
  func.func @drloss_kernel(%arg0: i32, %arg1: memref<5x256xf32, #tpu.memory_space<vmem>>, %arg2: memref<3x256xf32, #tpu.memory_space<vmem>>, %arg3: memref<8x128xf32, #tpu.memory_space<vmem>>) attributes {dimension_semantics = [#tpu.dimension_semantics<parallel>], iteration_bounds = array<i64: 4>, scalar_prefetch = 0 : i64, scratch_operands = 0 : i64, tpu.core_type = #tpu.core_type<tc>, window_params = [{transform_indices = @transform_0, window_bounds = array<i64: 5, 256>}, {transform_indices = @transform_1, window_bounds = array<i64: 3, 256>}, {transform_indices = @transform_2, window_bounds = array<i64: 8, 128>}]} {
    %c0 = arith.constant 0 : index
    %c0_0 = arith.constant 0 : index
    %0 = vector.load %arg1[%c0, %c0_0] : memref<5x256xf32, #tpu.memory_space<vmem>>, vector<3x256xf32>
    %c3 = arith.constant 3 : index
    %c0_1 = arith.constant 0 : index
    %1 = vector.load %arg1[%c3, %c0_1] : memref<5x256xf32, #tpu.memory_space<vmem>>, vector<2x256xf32>
    %c0_2 = arith.constant 0 : index
    %c0_3 = arith.constant 0 : index
    %2 = vector.load %arg2[%c0_2, %c0_3] : memref<3x256xf32, #tpu.memory_space<vmem>>, vector<3x256xf32>
    %3 = tpu.iota {dimensions = array<i32: 1>} : vector<1x256xi32>
    %c256_i32 = arith.constant 256 : i32
    %4 = arith.muli %arg0, %c256_i32 : i32
    %5 = vector.broadcast %4 : i32 to vector<1x256xi32>
    %6 = arith.addi %3, %5 : vector<1x256xi32>
    %c1000_i32 = arith.constant 1000 : i32
    %7 = vector.broadcast %c1000_i32 : i32 to vector<1x256xi32>
    %8 = arith.cmpi slt, %6, %7 : vector<1x256xi32>
    %9 = arith.extui %8 : vector<1x256xi1> to vector<1x256xi32>
    %10 = arith.sitofp %9 : vector<1x256xi32> to vector<1x256xf32>
    %cst = arith.constant 0.000000e+00 : f32
    %11 = vector.shape_cast %8 : vector<1x256xi1> to vector<1x256xi1>
    %12 = vector.broadcast %11 : vector<1x256xi1> to vector<3x256xi1>
    %13 = vector.broadcast %cst : f32 to vector<3x256xf32>
    %14 = arith.select %12, %0, %13 : vector<3x256xi1>, vector<3x256xf32>
    %cst_4 = arith.constant 0.000000e+00 : f32
    %15 = vector.shape_cast %8 : vector<1x256xi1> to vector<1x256xi1>
    %16 = vector.broadcast %15 : vector<1x256xi1> to vector<2x256xi1>
    %17 = vector.broadcast %cst_4 : f32 to vector<2x256xf32>
    %18 = arith.select %16, %1, %17 : vector<2x256xi1>, vector<2x256xf32>
    %cst_5 = arith.constant 0.000000e+00 : f32
    %19 = vector.shape_cast %8 : vector<1x256xi1> to vector<1x256xi1>
    %20 = vector.broadcast %19 : vector<1x256xi1> to vector<3x256xi1>
    %21 = vector.broadcast %cst_5 : f32 to vector<3x256xf32>
    %22 = arith.select %20, %2, %21 : vector<3x256xi1>, vector<3x256xf32>
    %cst_6 = arith.constant 0.000000e+00 : f32
    %23 = vector.broadcast %cst_6 : f32 to vector<3x256xf32>
    %24 = arith.subf %23, %14 : vector<3x256xf32>
    %25 = math.exp %24 : vector<3x256xf32>
    %cst_7 = arith.constant 1.000000e+00 : f32
    %26 = vector.broadcast %cst_7 : f32 to vector<3x256xf32>
    %27 = arith.addf %26, %25 : vector<3x256xf32>
    %cst_8 = arith.constant 1.000000e+00 : f32
    %28 = vector.broadcast %cst_8 : f32 to vector<3x256xf32>
    %29 = arith.divf %28, %27 : vector<3x256xf32>
    %30 = vector.extract_strided_slice %27 {offsets = [0, 0], sizes = [2, 256], strides = [1, 1]} : vector<3x256xf32> to vector<2x256xf32>
    %cst_9 = arith.constant -1.000000e+03 : f32
    %cst_10 = arith.constant 1.000000e+03 : f32
    %31 = vector.broadcast %cst_9 : f32 to vector<2x256xf32>
    %32 = arith.maximumf %31, %30 : vector<2x256xf32>
    %33 = vector.broadcast %cst_10 : f32 to vector<2x256xf32>
    %34 = arith.minimumf %33, %32 : vector<2x256xf32>
    %cst_11 = arith.constant 1.000000e+00 : f32
    %35 = vector.broadcast %cst_11 : f32 to vector<1x256xf32>
    %36 = vector.extract_strided_slice %29 {offsets = [0, 0], sizes = [1, 256], strides = [1, 1]} : vector<3x256xf32> to vector<1x256xf32>
    %37 = arith.mulf %35, %36 : vector<1x256xf32>
    %cst_12 = arith.constant 1.000000e-07 : f32
    %38 = vector.broadcast %cst_12 : f32 to vector<1x256xf32>
    %39 = arith.maximumf %37, %38 : vector<1x256xf32>
    %40 = vector.extract_strided_slice %29 {offsets = [1, 0], sizes = [1, 256], strides = [1, 1]} : vector<3x256xf32> to vector<1x256xf32>
    %41 = arith.mulf %39, %40 : vector<1x256xf32>
    %cst_13 = arith.constant 1.000000e-07 : f32
    %42 = vector.broadcast %cst_13 : f32 to vector<1x256xf32>
    %43 = arith.maximumf %41, %42 : vector<1x256xf32>
    %44 = vector.extract_strided_slice %29 {offsets = [2, 0], sizes = [1, 256], strides = [1, 1]} : vector<3x256xf32> to vector<1x256xf32>
    %45 = arith.mulf %43, %44 : vector<1x256xf32>
    %cst_14 = arith.constant 1.000000e-07 : f32
    %46 = vector.broadcast %cst_14 : f32 to vector<1x256xf32>
    %47 = arith.maximumf %45, %46 : vector<1x256xf32>
    %48 = tpu.concatenate %39, %43, %47 in 0 : vector<1x256xf32>, vector<1x256xf32>, vector<1x256xf32> -> vector<3x256xf32>
    %49 = math.log %48 : vector<3x256xf32>
    %cst_15 = arith.constant 1.000000e+00 : f32
    %50 = vector.broadcast %cst_15 : f32 to vector<3x256xf32>
    %51 = arith.subf %50, %48 : vector<3x256xf32>
    %52 = math.log %51 : vector<3x256xf32>
    %cst_16 = arith.constant -1.000000e+02 : f32
    %53 = vector.broadcast %cst_16 : f32 to vector<3x256xf32>
    %54 = arith.maximumf %52, %53 : vector<3x256xf32>
    %55 = arith.mulf %22, %49 : vector<3x256xf32>
    %cst_17 = arith.constant 1.000000e+00 : f32
    %56 = vector.broadcast %cst_17 : f32 to vector<3x256xf32>
    %57 = arith.subf %56, %22 : vector<3x256xf32>
    %58 = arith.mulf %57, %54 : vector<3x256xf32>
    %59 = arith.addf %55, %58 : vector<3x256xf32>
    %cst_18 = arith.constant 0.000000e+00 : f32
    %60 = vector.broadcast %cst_18 : f32 to vector<3x256xf32>
    %61 = arith.subf %60, %59 : vector<3x256xf32>
    %62 = vector.extract_strided_slice %29 {offsets = [1, 0], sizes = [2, 256], strides = [1, 1]} : vector<3x256xf32> to vector<2x256xf32>
    %63 = vector.extract_strided_slice %22 {offsets = [1, 0], sizes = [2, 256], strides = [1, 1]} : vector<3x256xf32> to vector<2x256xf32>
    %64 = vector.extract_strided_slice %22 {offsets = [0, 0], sizes = [2, 256], strides = [1, 1]} : vector<3x256xf32> to vector<2x256xf32>
    %65 = math.log %62 : vector<2x256xf32>
    %cst_19 = arith.constant -1.000000e+02 : f32
    %66 = vector.broadcast %cst_19 : f32 to vector<2x256xf32>
    %67 = arith.maximumf %65, %66 : vector<2x256xf32>
    %cst_20 = arith.constant 1.000000e+00 : f32
    %68 = vector.broadcast %cst_20 : f32 to vector<2x256xf32>
    %69 = arith.subf %68, %62 : vector<2x256xf32>
    %70 = math.log %69 : vector<2x256xf32>
    %cst_21 = arith.constant -1.000000e+02 : f32
    %71 = vector.broadcast %cst_21 : f32 to vector<2x256xf32>
    %72 = arith.maximumf %70, %71 : vector<2x256xf32>
    %73 = arith.mulf %63, %67 : vector<2x256xf32>
    %cst_22 = arith.constant 1.000000e+00 : f32
    %74 = vector.broadcast %cst_22 : f32 to vector<2x256xf32>
    %75 = arith.subf %74, %63 : vector<2x256xf32>
    %76 = arith.mulf %75, %72 : vector<2x256xf32>
    %77 = arith.addf %73, %76 : vector<2x256xf32>
    %cst_23 = arith.constant 0.000000e+00 : f32
    %78 = vector.broadcast %cst_23 : f32 to vector<2x256xf32>
    %79 = arith.subf %78, %77 : vector<2x256xf32>
    %80 = arith.subf %79, %18 : vector<2x256xf32>
    %81 = arith.mulf %80, %80 : vector<2x256xf32>
    %82 = arith.addf %80, %81 : vector<2x256xf32>
    %83 = arith.mulf %82, %64 : vector<2x256xf32>
    %84 = arith.mulf %83, %34 : vector<2x256xf32>
    %85 = arith.addf %18, %84 : vector<2x256xf32>
    %86 = vector.broadcast %10 : vector<1x256xf32> to vector<3x256xf32>
    %87 = arith.mulf %61, %86 : vector<3x256xf32>
    %88 = vector.broadcast %10 : vector<1x256xf32> to vector<2x256xf32>
    %89 = arith.mulf %85, %88 : vector<2x256xf32>
    %cst_24 = arith.constant dense<0.000000e+00> : vector<3xf32>
    %90 = vector.multi_reduction <add>, %87, %cst_24 [1] : vector<3x256xf32> to vector<3xf32>
    %91 = vector.shape_cast %90 : vector<3xf32> to vector<3x1xf32>
    %cst_25 = arith.constant dense<0.000000e+00> : vector<2xf32>
    %92 = vector.multi_reduction <add>, %89, %cst_25 [1] : vector<2x256xf32> to vector<2xf32>
    %93 = vector.shape_cast %92 : vector<2xf32> to vector<2x1xf32>
    %cst_26 = arith.constant 0.000000e+00 : f32
    %94 = vector.broadcast %cst_26 : f32 to vector<3x1xf32>
    %95 = tpu.concatenate %91, %93, %94 in 0 : vector<3x1xf32>, vector<2x1xf32>, vector<3x1xf32> -> vector<8x1xf32>
    %96 = vector.shape_cast %95 : vector<8x1xf32> to vector<8x1xf32>
    %97 = vector.broadcast %96 : vector<8x1xf32> to vector<8x128xf32>
    %c0_27 = arith.constant 0 : index
    %c0_28 = arith.constant 0 : index
    %98 = vector.load %arg3[%c0_27, %c0_28] : memref<8x128xf32, #tpu.memory_space<vmem>>, vector<8x128xf32>
    tpu.vector_store %arg3[%c0_27, %c0_28], %97 {strides = array<i32>} : memref<8x128xf32, #tpu.memory_space<vmem>>, vector<8x128xf32>,
    return
  }
  func.func @transform_0(%arg0: i32) -> (i32, i32) {
    %c0_i32 = arith.constant 0 : i32
    %c0_i32_0 = arith.constant 0 : i32
    return %c0_i32, %arg0 : i32, i32
  }
  func.func @transform_1(%arg0: i32) -> (i32, i32) {
    %c0_i32 = arith.constant 0 : i32
    %c0_i32_0 = arith.constant 0 : i32
    return %c0_i32, %arg0 : i32, i32
  }
  func.func @transform_2(%arg0: i32) -> (i32, i32) {
    %c0_i32 = arith.constant 0 : i32
    %c0_i32_0 = arith.constant 0 : i32
    return %c0_i32, %arg0 : i32, i32
  }
}

</mosaic_0001>

<bundles_post_ra>
// kernel: tpu_custom_call.1
= control target key start
LH: loop header
LB: loop body
LE: loop exit
PB: predicated region body
PF: predicated region fallthrough
CT: control target
= control target key end

     0   :  { %7 = vsyncpa [#allocation3], 0  ;;  %s1013_s0 = inlined_call_operand.hbm [shape: f32[5,1000], index: 0, kind: input, shape index: {}]   ;;  %s1014_s1 = inlined_call_operand.hbm [shape: f32[3,1000], index: 1, kind: input, shape index: {}]   ;;  %s1015_s2 = inlined_call_operand.hbm [shape: f32[8,512], index: 2, kind: output, shape index: {}]  }
   0x1   :  { %9 = vsyncpa [#allocation3 + $0x1], 0 }
   0x2   :  { %10 = vsyncpa [#allocation6], 0 }
   0x3   :  { %12 = vsyncpa [#allocation6 + $0x1], 0 }
   0x4   :  { %13 = vsyncpa [#allocation4], 0 }
   0x5   :  { %15 = vsyncpa [#allocation4 + $0x1], 0  ;;  %s782_s9 = smov 0   ;;  %s784_s10 = smov 0  }
   0x6   :  { %s786_s11 = smov 0   ;;  %s788_s12 = smov 0  }
   0x7 LB: > { %s803_s13 = sadd.s32 4294967295, %s763_s12   ;;  %s530_s14 = sadd.s32 4294967294, %s763_s12   ;;  %s763_s12 = sphi %s788_s12, %s1025_s12   ;;  %s759_s11 = sphi %s786_s11, %s1024_s11   ;;  %s755_s10 = sphi %s784_s10, %s1023_s10   ;;  %s751_s9 = sphi %s782_s9, %s1022_s9  }
   0x8   : > { %s807_s15 = sadd.s32 1, %s763_s12   ;;  %s28_s16 = sadd.s32 1, %s759_s11 }
   0x9   : > { %s25_s17 = ssub.s32 %s763_s12, %s807_s15  ;;  %p35_p0 = scmp.ne.s32.totalorder %s759_s11, %s755_s10 }
   0xa   : > { %p26_p1 = scmp.eq.s32.totalorder %s25_s17, 0  ;;  %p36_p2 = scmp.eq.s32.totalorder %s763_s12, 0 }
   0xb   : > { %p41_p3 = scmp.ne.s32.totalorder %s755_s10, %s751_s9  ;;  %p42_p4 = scmp.eq.s32.totalorder %s803_s13, 0 }
   0xc   : > { %s819_s18 = scalar_select %p26_p1, %s759_s11, %s28_s16  }
   0xd   : > { %p821_p5 = por %p36_p2, %p35_p0  ;;  %p825_p6 = por %p42_p4, %p41_p3 }
   0xe   : > { %p91_p7 = scmp.eq.s32.totalorder %s803_s13, 3  ;;  %p97_p8 = scmp.eq.s32.totalorder %s530_s14, 3 }
   0xf   : > { %p571_p9 = scmp.lt.s32.totalorder %s763_s12, 4  ;;  %s840_s23 = sand.u32 1, %s759_s11  }
  0x10   : > { %p831_p10 = por %p91_p7, %p35_p0  ;;  %p835_p11 = por %p97_p8, %p41_p3 }
  0x11   : > { %s552_s24 = sshll.u32 %s763_s12, 4  ;;  %s533_s25 = sshll.u32 %s840_s23, 4 }
  0x12   : > { %s126_s28 = scalar_lea.hbm %s1013_s0, %s552_s24  ;;  %s121_s30 = scalar_lea.vmem [#allocation2], %s533_s25 }
  0x13   : > { %s128_s29 = sshll.u32 %s126_s28, 4  ;;  %s130_s3 = sshll.u32 %s121_s30, 4  ;;  %s129_s29 = int_to_ptr.hbm [resolvable:$true] %s128_s29  ;;  %s131_s3 = int_to_ptr.vmem [resolvable:$true] %s130_s3 }
  0x14   : > { %p849_p12 = pnand %p571_p9, %p821_p5  ;;  %p539_p13 = scmp.ge.s32.totalorder %s763_s12, 1 }
  0x15   : > { %p155_p0 = scmp.lt.s32.totalorder %s763_s12, 5  ;;  %s536_s5 = sshll.u32 %s840_s23, 3 }
  0x16   : > { %s118_s6 = scalar_lea.sflag [#allocation3], %s840_s23  ;;  %s633_s7 = sshra.s32 %s129_s29, 4  ;;  %s634_s7 = int_to_ptr.hbm [resolvable:$true] %s633_s7 }
  0x17   : > { %s635_s8 = scalar_lea.hbm %s634_s7, 16  ;;  %p637_p2 = pneg %p849_p12 }
  0x18   : > { %p636_p1 = scmp.ne.s32.totalorder %s634_s7, %s635_s8  ;;  %s640_s17 = scalar_lea.hbm %s1013_s0, 64 }
  0x19   : > { %p641_p5 = scmp.lt.s32.totalorder %s634_s7, %s1013_s0  ;;  %p642_p7 = scmp.lt.s32.totalorder %s640_s17, %s635_s8 }
  0x1a   : > { %p638_p3 = pnand %p637_p2, %p636_p1 }
  0x1b   : > { %p643_p8 = por %p642_p7, %p641_p5 }
  0x1c   : > { %p639_p4 = pneg %p638_p3 }
  0x1e   : > { %p644_p9 = pnand %p643_p8, %p639_p4 }
  0x20   : > { %647 = shalt.err (!%p644_p9)
}
  0x21   : > { %563 = dma.hbm_to_vmem [thread:$0]  (!%p849_p12), %s129_s29, 256, %s131_s3, %s118_s6  }
  0x22   : > { %p874_p1 = pnand %p539_p13, %p155_p0  ;;  %s553_s26 = sshll.u32 %s763_s12, 3 }
  0x23   : > { %s141_s27 = scalar_lea.vmem [#allocation5], %s536_s5  ;;  %s146_s8 = scalar_lea.hbm %s1014_s1, %s553_s26 }
  0x24   : > { %s150_s28 = sshll.u32 %s141_s27, 4  ;;  %s148_s14 = sshll.u32 %s146_s8, 4  ;;  %s151_s28 = int_to_ptr.vmem [resolvable:$true] %s150_s28  ;;  %s149_s14 = int_to_ptr.hbm [resolvable:$true] %s148_s14 }
  0x25   : > { %s138_s16 = scalar_lea.sflag [#allocation6], %s840_s23  ;;  %s663_s17 = sshra.s32 %s149_s14, 4  ;;  %s664_s17 = int_to_ptr.hbm [resolvable:$true] %s663_s17 }
  0x26   : > { %s665_s29 = scalar_lea.hbm %s664_s17, 8  ;;  %s670_s5 = scalar_lea.hbm %s1014_s1, 32 }
  0x27   : > { %p666_p3 = scmp.ne.s32.totalorder %s664_s17, %s665_s29  ;;  %p671_p4 = scmp.lt.s32.totalorder %s664_s17, %s1014_s1 }
  0x28   : > { %p672_p5 = scmp.lt.s32.totalorder %s670_s5, %s665_s29 }
  0x29   : > { %p668_p13 = pnand %p666_p3, %p637_p2 }
  0x2a   : > { %p673_p7 = por %p672_p5, %p671_p4 }
  0x2b   : > { %p669_p0 = pneg %p668_p13 }
  0x2d   : > { %p674_p8 = pnand %p673_p7, %p669_p0 }
  0x2f   : > { %677 = shalt.err (!%p674_p8)
}
  0x30   : > { %566 = dma.hbm_to_vmem [thread:$0]  (!%p849_p12), %s149_s14, 128, %s151_s28, %s138_s16  }
  0x31   : > { %159 = sbr.rel (%p874_p1) target bundleno = 379 (0x17b), region = 28  ;;  %s897_s23 = sand.u32 (!%p874_p1), 1, %s755_s10  }
  0x32   : > { %s540_s26 = sshll.u32 (!%p874_p1), %s897_s23, 4  ;;  %s162_s27 = scalar_lea.sflag (!%p874_p1), [#allocation3], %s897_s23 }
  0x33   : > { %s901_s30 = scalar_lea.vmem (!%p874_p1), [#allocation2], %s540_s26 }
  0x36   : > { %738 = dma.done.wait (%p825_p6), %s162_s27, 256  }
  0x37   : > { %740 = vsyncadd (%p825_p6), %s162_s27, 4294967040  ;;  %s541_s4 = sshll.u32 %s897_s23, 3  ;;  %s172_s25 = scalar_lea.sflag [#allocation6], %s897_s23 }
  0x38   : > { %s175_s28 = scalar_lea.vmem [#allocation5], %s541_s4 }
  0x39   : > { %742 = dma.done.wait (%p825_p6), %s172_s25, 128  }
  0x3a   : > { %744 = vsyncadd (%p825_p6), %s172_s25, 4294967168  ;;  %v209_v0 = vlaneseq  ;;  %s543_s7 = sshll.u32 %s803_s13, 8  ;;  %v208_v6 = vld [vmem:[%s175_s28] sm:$0x77]  ;;  %v205_v8 = vld [vmem:[%s901_s30 + $0x8] sm:$0x7] }
  0x3b   : > { %v213_v1 = vstv %s543_s7  ;;  %v204_v7 = vld [vmem:[%s901_s30] sm:$0x7]  ;;  %229 = vst [vmem:[#allocation1] ss:$2 sm:$0xff] %v208_v6  ;;  %vm310_vm10 = vcmask 1040384   ;;  %vm313_vm11 = vcmask 1041408  }
  0x3c   : > { %v210_v2 = vand.u32 127, %v209_v0  ;;  %v206_v0 = vld [vmem:[%s901_s30] sm:$0x18]  ;;  %vm400_vm12 = vcmask 1042432   ;;  %vm406_vm13 = vcmask 1044483   ;;  %vm413_vm14 = vcmask 1044480  }
  0x3d   : > { %s549_s20 = sshll.u32 %s803_s13, 3  ;;  %s201_s17 = scalar_lea.vmem [#allocation7], %s541_s4 }
  0x3e   : > { %v211_v3 = vadd.s32 128, %v210_v2  ;;  %v916_v4 = vadd.s32 %v213_v1, %v210_v2  ;;  %s432_s16 = scalar_lea.hbm %s1015_s2, %s549_s20  ;;  %s434_s29 = sshll.u32 %s201_s17, 4  ;;  %s435_s29 = int_to_ptr.vmem [resolvable:$true] %s434_s29 }
  0x3f   : > { %s436_s3 = sshll.u32 %s432_s16, 4  ;;  %s422_s6 = scalar_lea.sflag [#allocation4], %s897_s23  ;;  %s437_s3 = int_to_ptr.hbm [resolvable:$true] %s436_s3 }
  0x40   : > { %v918_v5 = vadd.s32 %v213_v1, %v211_v3  ;;  %vm216_vm0 = vcmp.lt.s32.totalorder %v916_v4, 1000  ;;  %s707_s5 = sshra.s32 %s437_s3, 4  ;;  %s713_s26 = scalar_lea.hbm %s1015_s2, 32  ;;  %s708_s5 = int_to_ptr.hbm [resolvable:$true] %s707_s5 }
  0x41   : > { %v224_v9 = vsel %vm216_vm0, %v204_v7, 0.0  ;;  %s709_s19 = scalar_lea.hbm %s708_s5, 8  ;;  %p714_p9 = scmp.lt.s32.totalorder %s708_s5, %s1015_s2 }
  0x42   : > { %vm217_vm1 = vcmp.lt.s32.totalorder %v918_v5, 1000  ;;  %v236_v11 = vsub.f32 0.0, %v224_v9  ;;  %v230_v49 = vld.sshfl [vmem:[#allocation1] sm:$0xff pattern:$0x75316420]  ;;  %p710_p6 = scmp.ne.s32.totalorder %s708_s5, %s709_s19  ;;  %p715_p1 = scmp.lt.s32.totalorder %s713_s26, %s709_s19 }
  0x43   : > { %v225_v10 = vsel %vm217_vm1, %v205_v8, 0.0  ;;  %v231_v51 = vld.sshfl [vmem:[#allocation1 + $0x8] sm:$0xff pattern:$0x75316420]  ;;  %v944_v55 = vsel %vm216_vm0, %v230_v49, 0.0 }
  0x44   : > { %v237_v12 = vsub.f32 0.0, %v225_v10  ;;  %v238_v13 = vmul.f32 1.442695, %v236_v11  ;;  %v948_v59 = vsel %vm217_vm1, %v231_v51, 0.0  ;;  %v330_v7 = vsub.f32 1.0, %v944_v55  ;;  %p711_p12 = pnand %p710_p6, %p831_p10  ;;  %p716_p3 = por %p715_p1, %p714_p9 }
  0x45   : > { %v331_v11 = vsub.f32 1.0, %v948_v59 }
  0x46   : > { %v240_v14 = vmul.f32 1.442695, %v237_v12  ;;  %609 = vpow2.f32 %v238_v13  ;;  %p712_p2 = pneg %p711_p12 }
  0x48   : > { %611 = vpow2.f32 %v240_v14  ;;  %p717_p13 = pnand %p716_p3, %p712_p2 }
  0x4c   : > { %v610_v15 = vpop.eup %609 }
  0x4d   : > { %v928_v17 = vadd.f32 1.0, %v610_v15 }
  0x4e   : > { %v612_v16 = vpop.eup %611 }
  0x4f   : > { %v930_v18 = vadd.f32 1.0, %v612_v16  ;;  %613 = vrcp.f32 %v928_v17  ;;  %vm249_vm2 = vweird.f32 %v928_v17  ;;  %v255_v22 = vand.u32 2147483648, %v928_v17  ;;  %v207_v16 = vld [vmem:[%s901_s30 + $0x8] sm:$0x18] }
  0x50   : > { %v253_v25 = vand.u32 2147483647, %v928_v17 }
  0x51   : > { %615 = vrcp.f32 %v930_v18  ;;  %v270_v26 = vand.u32 2147483648, %v930_v18  ;;  %vm264_vm4 = vweird.f32 %v930_v18  ;;  %v268_v28 = vand.u32 2147483647, %v930_v18 }
  0x52   : > { %v256_v30 = vor.u32 1.1754944e-38, %v255_v22  ;;  %vm254_vm7 = vcmp.eq.f32.partialorder %v253_v25, 8.507059e+37 }
  0x53   : > { %v271_v33 = vor.u32 1.1754944e-38, %v270_v26  ;;  %vm269_vm9 = vcmp.eq.f32.partialorder %v268_v28, 8.507059e+37  ;;  %v227_v28 = vsel %vm217_vm1, %v207_v16, 0.0 }
  0x55   : > { %v614_v19 = vpop.eup %613 }
  0x56   : > { %v245_v21 = vmul.f32 %v614_v19, %v928_v17  ;;  %vm250_vm3 = vweird.f32 %v614_v19 }
  0x57   : > { %v616_v20 = vpop.eup %615  ;;  %vm251_vm6 = vmor %vm249_vm2, %vm250_vm3 }
  0x58   : > { %v260_v23 = vmul.f32 %v616_v20, %v930_v18  ;;  %v246_v24 = vsub.f32 1.0, %v245_v21  ;;  %vm265_vm5 = vweird.f32 %v616_v20 }
  0x59   : > { %vm266_vm8 = vmor %vm264_vm4, %vm265_vm5 }
  0x5a   : > { %v261_v27 = vsub.f32 1.0, %v260_v23  ;;  %v247_v29 = vmul.f32 %v614_v19, %v246_v24 }
  0x5c   : > { %v262_v31 = vmul.f32 %v616_v20, %v261_v27  ;;  %v248_v32 = vadd.f32 %v614_v19, %v247_v29 }
  0x5e   : > { %v263_v34 = vadd.f32 %v616_v20, %v262_v31  ;;  %v252_v35 = vsel %vm251_vm6, %v614_v19, %v248_v32  ;;  %v957_v19 = vsel %vm216_vm0, %v206_v0, 0.0 }
  0x5f   : > { %v257_v36 = vsel %vm254_vm7, %v256_v30, %v252_v35  ;;  %v362_v32 = vrot.slane %v957_v19, 2 }
  0x60   : > { %v267_v37 = vsel %vm266_vm8, %v616_v20, %v263_v34  ;;  %v278_v39 = vmax.f32 %v257_v36, 1e-07  ;;  %v282_v40 = vrot.slane %v257_v36, 1  ;;  %v344_v43 = vsub.f32 1.0, %v257_v36 }
  0x61   : > { %v272_v38 = vsel %vm269_vm9, %v271_v33, %v267_v37  ;;  %v290_v45 = vrot.slane %v257_v36, 2  ;;  %617 = vlog2.f32 %v257_v36  ;;  %v363_v34 = vrot.slane %v227_v28, 2 }
  0x62   : > { %v279_v41 = vmax.f32 %v272_v38, 1e-07  ;;  %v283_v42 = vrot.slane %v272_v38, 1  ;;  %v286_v44 = vmul.f32 %v282_v40, %v278_v39  ;;  %v345_v46 = vsub.f32 1.0, %v272_v38 }
  0x63   : > { %v291_v48 = vrot.slane %v272_v38, 2  ;;  %619 = vlog2.f32 %v344_v43 }
  0x64   : > { %v287_v47 = vmul.f32 %v283_v42, %v279_v41  ;;  %v288_v50 = vmax.f32 %v286_v44, 1e-07  ;;  %621 = vlog2.f32 %v345_v46  ;;  %v546_v42 = vclamps-f32 %v928_v17, 1000.0 }
  0x65   : > { %623 = vlog2.f32 %v272_v38  ;;  %v547_v46 = vclamps-f32 %v930_v18, 1000.0 }
  0x66   : > { %v289_v52 = vmax.f32 %v287_v47, 1e-07  ;;  %v294_v53 = vmul.f32 %v290_v45, %v288_v50  ;;  %v300_v54 = vrot.slane %v288_v50, 7  ;;  %v374_v50 = vrot.slane %v944_v55, 7 }
  0x67   : > { %v618_v58 = vpop.eup %617 }
  0x68   : > { %v295_v56 = vmul.f32 %v291_v48, %v289_v52  ;;  %v301_v57 = vrot.slane %v289_v52, 7  ;;  %v296_v60 = vmax.f32 %v294_v53, 1e-07  ;;  %v311_v63 = vsel %vm310_vm10, %v278_v39, %v300_v54 }
  0x69   : > { %v620_v61 = vpop.eup %619  ;;  %v339_v1 = vmul.f32 0.6931472, %v618_v58  ;;  %v375_v54 = vrot.slane %v948_v59, 7  ;;  %v382_v58 = vrot.slane %v546_v42, 7 }
  0x6a   : > { %v297_v62 = vmax.f32 %v295_v56, 1e-07  ;;  %v622_v2 = vpop.eup %621  ;;  %v306_v3 = vrot.slane %v296_v60, 6  ;;  %v312_v6 = vsel %vm310_vm10, %v279_v41, %v301_v57  ;;  %v347_v8 = vmul.f32 0.6931472, %v620_v61 }
  0x6b   : > { %v624_v9 = vpop.eup %623  ;;  %v349_v12 = vmul.f32 0.6931472, %v622_v2  ;;  %v342_v13 = vmax.f32 %v339_v1, -100.0  ;;  %v765_v2 = vmov 0.0  }
  0x6c   : > { %v307_v10 = vrot.slane %v297_v62, 6  ;;  %v314_v14 = vsel %vm313_vm11, %v311_v63, %v306_v3  ;;  %v350_v15 = vmax.f32 %v347_v8, -100.0  ;;  %v341_v20 = vmul.f32 0.6931472, %v624_v9 }
  0x6d   : > { %625 = vlog2.f32 %v314_v14  ;;  %v320_v22 = vsub.f32 1.0, %v314_v14  ;;  %v351_v23 = vmax.f32 %v349_v12, -100.0  ;;  %v352_v29 = vmul.f32 %v342_v13, %v944_v55 }
  0x6e   : > { %v315_v21 = vsel %vm313_vm11, %v312_v6, %v307_v10  ;;  %v354_v25 = vmul.f32 %v350_v15, %v330_v7  ;;  %v343_v26 = vmax.f32 %v341_v20, -100.0  ;;  %v383_v62 = vrot.slane %v547_v46, 7 }
  0x6f   : > { %627 = vlog2.f32 %v315_v21  ;;  %v321_v24 = vsub.f32 1.0, %v315_v21  ;;  %v355_v27 = vmul.f32 %v351_v23, %v331_v11  ;;  %v544_v3 = vsel %vm216_vm0, 1.0, %v765_v2 }
  0x70   : > { %629 = vlog2.f32 %v320_v22  ;;  %v353_v30 = vmul.f32 %v343_v26, %v948_v59  ;;  %v356_v31 = vadd.f32 %v354_v25, %v352_v29  ;;  %v545_v8 = vsel %vm217_vm1, 1.0, %v765_v2 }
  0x71   : > { %631 = vlog2.f32 %v321_v24  ;;  %v766_v25 = vmov 0  }
  0x72   : > { %v357_v33 = vadd.f32 %v355_v27, %v353_v30  ;;  %v358_v36 = vsub.f32 0.0, %v356_v31  ;;  %607 = vset.pattern.permute.xlu1 %v766_v25  ;;  %608 = vset.pattern.permute.xlu0 %v766_v25 }
  0x73   : > { %v626_v35 = vpop.eup %625 }
  0x74   : > { %v317_v38 = vmul.f32 0.6931472, %v626_v35  ;;  %v359_v39 = vsub.f32 0.0, %v357_v33  ;;  %v366_v43 = vsub.f32 %v358_v36, %v362_v32 }
  0x75   : > { %v628_v37 = vpop.eup %627 }
  0x76   : > { %v630_v40 = vpop.eup %629  ;;  %v319_v41 = vmul.f32 0.6931472, %v628_v37  ;;  %v367_v47 = vsub.f32 %v359_v39, %v363_v34  ;;  %v368_v49 = vmul.f32 %v366_v43, %v366_v43  ;;  %v328_v52 = vmul.f32 %v317_v38, %v944_v55 }
  0x77   : > { %v632_v44 = vpop.eup %631  ;;  %v323_v45 = vmul.f32 0.6931472, %v630_v40 }
  0x78   : > { %v325_v48 = vmul.f32 0.6931472, %v632_v44  ;;  %v369_v53 = vmul.f32 %v367_v47, %v367_v47  ;;  %v329_v57 = vmul.f32 %v319_v41, %v948_v59  ;;  %v370_v17 = vadd.f32 %v368_v49, %v366_v43 }
  0x79   : > { %v326_v51 = vmax.f32 %v323_v45, -100.0 }
  0x7a   : > { %v327_v56 = vmax.f32 %v325_v48, -100.0  ;;  %v371_v61 = vadd.f32 %v369_v53, %v367_v47  ;;  %v378_v63 = vmul.f32 %v374_v50, %v370_v17 }
  0x7b   : > { %v332_v60 = vmul.f32 %v330_v7, %v326_v51 }
  0x7c   : > { %v333_v18 = vmul.f32 %v331_v11, %v327_v56  ;;  %v379_v1 = vmul.f32 %v375_v54, %v371_v61  ;;  %v386_v6 = vmul.f32 %v382_v58, %v378_v63 }
  0x7d   : > { %v334_v0 = vadd.f32 %v332_v60, %v328_v52 }
  0x7e   : > { %v335_v55 = vadd.f32 %v333_v18, %v329_v57  ;;  %v387_v59 = vmul.f32 %v383_v62, %v379_v1  ;;  %v390_v7 = vrot.slane %v386_v6, 6 }
  0x7f   : > { %v336_v9 = vsub.f32 0.0, %v334_v0 }
  0x80   : > { %v337_v10 = vsub.f32 0.0, %v335_v55  ;;  %v391_v13 = vrot.slane %v387_v59, 6  ;;  %v394_v14 = vadd.f32 %v390_v7, %v957_v19 }
  0x81   : > { %v396_v12 = vmul.f32 %v544_v3, %v336_v9 }
  0x82   : > { %v397_v11 = vmul.f32 %v545_v8, %v337_v10  ;;  %v395_v16 = vadd.f32 %v391_v13, %v227_v28  ;;  %v398_v20 = vmul.f32 %v544_v3, %v394_v14 }
  0x83   : > { %v401_v15 = vsel %vm400_vm12, %v396_v12, 0.0 }
  0x84   : > { %v402_v4 = vsel %vm400_vm12, %v397_v11, 0.0  ;;  %v399_v22 = vmul.f32 %v545_v8, %v395_v16  ;;  %v407_v5 = vsel %vm406_vm13, %v398_v20, 0.0 }
  0x85   : > { %v403_v21 = vadd.f32 %v402_v4, %v401_v15 }
  0x86   : > { %v408_v23 = vsel %vm406_vm13, %v399_v22, 0.0 }
  0x87   : > { %404 = vadd.xlane.f32.xlu0 %v403_v21  ;;  %v409_v24 = vadd.f32 %v408_v23, %v407_v5 }
  0x8f   : > { %410 = vadd.xlane.f32.xlu0 %v409_v24 }
  0xfa   : > { %v405_v19 = vpop.xlane.xlu0 %404 }
 0x102   : > { %v411_v26 = vpop.xlane.xlu0 %410 }
 0x103   : > { %v412_v27 = vsel %vm400_vm12, %v405_v19, %v411_v26 }
 0x104   : > { %v414_v28 = vsel %vm413_vm14, %v412_v27, 0.0 }
 0x105   : > { %417 = vperm.xlu1 %607, %v414_v28  }
 0x177   : > { %v418_v29 = vpop.permute.xlu1 %417 }
 0x178   : > { %420 = vst [vmem:[%s201_s17] sm:$0xff] %v418_v29 }
 0x179   : > { %720 = shalt.err (!%p717_p13)
}
 0x17a   : > { %558 = dma.vmem_to_hbm [thread:$0]  (%p831_p10), %s435_s29, 128, %s437_s3, %s422_s6  }
 0x17b PF: > { %p572_p0 = scmp.ge.s32.totalorder %s763_s12, 2  ;;  %s448_s23 = sand.u32 1, %s751_s9  }
 0x17c   : > { %s449_s4 = scalar_lea.sflag [#allocation4], %s448_s23 }
 0x17d   : > { %p568_p4 = pnand %p572_p0, %p835_p11 }
 0x17f   : > { %p569_p5 = pneg %p568_p4 }
 0x181   : > { %746 = dma.done.wait (%p569_p5), %s449_s4, 128  }
 0x182   : > { %748 = vsyncadd (%p569_p5), %s449_s4, 4294967168  ;;  %p18_p7 = scmp.ge.s32.totalorder %s807_s15, 6   ;;  %s1022_s9 = smov %s755_s10 }
 0x183   : > { %s1023_s10 = smov %s759_s11  ;;  %s1024_s11 = smov %s819_s18 }
 0x184   : > { %s1025_s12 = smov %s807_s15  ;;  %20 = sbr.rel (!%p18_p7) target bundleno = 7 (0x7), region = 86 }
 0x189   :  { %455 = vsyncpa [#allocation3], 1 }
 0x18a   :  { %457 = vsyncpa [#allocation3 + $0x1], 1 }
 0x18b   :  { %458 = vsyncpa [#allocation6], 1 }
 0x18c   :  { %460 = vsyncpa [#allocation6 + $0x1], 1 }
 0x18d   :  { %461 = vsyncpa [#allocation4], 1 }
 0x18e   :  { %463 = vsyncpa [#allocation4 + $0x1], 1 }

</bundles_post_ra>
